<compile_context>
chip_gen: v7x
topology: tpu7x:2x2x1
jax: 0.10.0
libtpu: 0.0.40
codegen_flags: <defaults>
</compile_context>

<pallas_src>
import functools

import jax
import jax.numpy as jnp
from jax.experimental import pallas as pl
from jax.experimental.pallas import tpu as pltpu


def _mlp_kernel(x_ref, w1_ref, b1_ref, w2_ref, b2_ref, w3_ref, b3_ref, o_ref,
                *, lane_dense):
    """Fused 3-layer MLP: silu(silu(x@W1+b1)@W2+b2)@W3+b3 (linear output)."""
    x = x_ref[...]

    # Layer 1: MXU matmul with f32 accumulation; bias add + SiLU in f32.
    h = jnp.dot(x, w1_ref[...], preferred_element_type=jnp.float32) + b1_ref[...]
    h = h * jax.nn.sigmoid(h)          # SiLU; logistic lowers to the EUP slot

    # Layer 2
    h = jnp.dot(h.astype(w2_ref.dtype), w2_ref[...],
                preferred_element_type=jnp.float32) + b2_ref[...]
    h = h * jax.nn.sigmoid(h)

    # Layer 3 (linear output: out_act is None in the reference module)
    h = jnp.dot(h.astype(w3_ref.dtype), w3_ref[...],
                preferred_element_type=jnp.float32) + b3_ref[...]

    if lane_dense:
        # Present the (bm, out_dim) result as a lane-dense
        # (bm*out_dim/128, 128) slab -> full-width stores instead of masked.
        h = h.reshape(o_ref.shape)
    o_ref[...] = h.astype(o_ref.dtype)


def _choose_block_batch(B, requested):
    """Pick a batch tile: big (amortize grid-step overhead) but with >=2 grid
    steps where possible so both v7x TensorCores get work."""
    if B <= 16:
        return B                      # tiny batch: single full-array block
    bm = max(8, min(requested, B))
    while bm > 8 and pl.cdiv(B, bm) < 2:
        bm //= 2
    return max(8, (bm // 8) * 8)      # sublane-aligned


def fully_connected_net(x, params, *, block_batch=1024, compute_dtype=None,
                        lane_dense_out=True):
    """Run the fused MLP Pallas kernel.

    x:             [B, in_dim]
    params:        dict with w1 [in_dim,h1], b1 [1,h1], w2 [h1,h2], b2 [1,h2],
                   w3 [h2,out_dim], b3 [1,out_dim]
    compute_dtype: e.g. jnp.bfloat16 to halve HBM read traffic (f32 accum).
    """
    w1, b1 = params["w1"], params["b1"]
    w2, b2 = params["w2"], params["b2"]
    w3, b3 = params["w3"], params["b3"]

    B, in_dim = x.shape
    out_dim = w3.shape[1]
    out_dtype = x.dtype

    if compute_dtype is not None:
        x = x.astype(compute_dtype)
        w1, w2, w3 = (w.astype(compute_dtype) for w in (w1, w2, w3))
    # Biases are added post-accumulation -> keep them f32.
    b1, b2, b3 = (b.astype(jnp.float32) for b in (b1, b2, b3))

    bm = _choose_block_batch(B, block_batch)
    grid = (pl.cdiv(B, bm),)

    # Weights / biases are tiny and use grid-invariant index maps, so Pallas
    # keeps them resident in VMEM (no per-step DMA re-issue).
    full = lambda a: pl.BlockSpec(a.shape, lambda i: (0,) * a.ndim)
    weight_args = (w1, b1, w2, b2, w3, b3)
    weight_specs = [full(a) for a in weight_args]

    h1, h2 = w1.shape[1], w2.shape[1]
    cost = pl.CostEstimate(
        flops=2 * B * (in_dim * h1 + h1 * h2 + h2 * out_dim),
        transcendentals=B * (h1 + h2),
        bytes_accessed=(x.size * x.dtype.itemsize
                        + B * out_dim * jnp.dtype(out_dtype).itemsize
                        + sum(a.size * a.dtype.itemsize for a in weight_args)),
    )

    def call(lane_dense):
        if lane_dense:
            rows = (B * out_dim) // 128
            block_rows = (bm * out_dim) // 128
            out_shape = jax.ShapeDtypeStruct((rows, 128), out_dtype)
            out_spec = pl.BlockSpec((block_rows, 128), lambda i: (i, 0))
        else:
            out_shape = jax.ShapeDtypeStruct((B, out_dim), out_dtype)
            out_spec = pl.BlockSpec((bm, out_dim), lambda i: (i, 0))

        out = pl.pallas_call(
            functools.partial(_mlp_kernel, lane_dense=lane_dense),
            out_shape=out_shape,
            grid_spec=pltpu.PrefetchScalarGridSpec(
                num_scalar_prefetch=0,
                grid=grid,
                in_specs=[pl.BlockSpec((bm, in_dim), lambda i: (i, 0))]
                         + weight_specs,
                out_specs=out_spec,
            ),
            compiler_params=pltpu.CompilerParams(
                dimension_semantics=("parallel",)),
            cost_estimate=cost,
        )(x, *weight_args)
        # Row-major contiguous -> this reshape is effectively free in XLA.
        return out.reshape(B, out_dim) if lane_dense else out

    can_lane_dense = (
        lane_dense_out
        and B % bm == 0
        and (bm * out_dim) % 128 == 0
        and ((bm * out_dim // 128) % 8 == 0 or bm == B)
    )
    if can_lane_dense:
        try:
            return call(lane_dense=True)
        except Exception:
            # If Mosaic can't lower the in-kernel (bm, out_dim) ->
            # (bm*out_dim/128, 128) relayout, fall back to masked-store layout.
            pass
    return call(lane_dense=False)


def init_params(key, in_dim, out_dim, n_layers=None, dtype=jnp.float32):
    """Matches the PyTorch module init: each nn.Linear(in_feat, out_feat) has
    weight & bias ~ U(-1/in_feat, 1/in_feat).  Weights stored transposed as
    [in_feat, out_feat]; biases as [1, out_feat]."""
    if n_layers is None:
        n_layers = [20, 20, out_dim]
    else:
        n_layers = list(n_layers) + [out_dim]
    assert len(n_layers) == 3, "this kernel fuses exactly 3 linear layers"

    params = {}
    in_feat = in_dim
    for idx, out_feat in enumerate(n_layers, start=1):
        key, kw, kb = jax.random.split(key, 3)
        bound = 1.0 / in_feat
        params[f"w{idx}"] = jax.random.uniform(
            kw, (in_feat, out_feat), dtype, minval=-bound, maxval=bound)
        params[f"b{idx}"] = jax.random.uniform(
            kb, (1, out_feat), dtype, minval=-bound, maxval=bound)
        in_feat = out_feat
    return params


def _reference(x, params):
    """Pure-JAX reference for correctness checking."""
    h = jax.nn.silu(x @ params["w1"] + params["b1"])
    h = jax.nn.silu(h @ params["w2"] + params["b2"])
    return h @ params["w3"] + params["b3"]


if __name__ == "__main__":
    key = jax.random.PRNGKey(0)
    in_dim, out_dim = 16, 8

    kx, kp = jax.random.split(key)
    params = init_params(kp, in_dim, out_dim)

    # 1) Main check: batch large enough to exercise the lane-dense output path
    #    and a >=2-step "parallel" grid (bm=128, grid=(2,)).
    B = 256
    x = jax.random.normal(kx, (B, in_dim), jnp.float32)
    out = jax.block_until_ready(fully_connected_net(x, params))
    ref = _reference(x, params)
    assert out.shape == (B, out_dim)
    assert jnp.allclose(out, ref, atol=1e-5, rtol=1e-5), "f32 mismatch"

    # 2) Ragged batch: non-divisible grid, masked writeback, plain out layout.
    xr = jax.random.normal(kx, (50, in_dim), jnp.float32)
    outr = jax.block_until_ready(fully_connected_net(xr, params))
    assert outr.shape == (50, out_dim)
    assert jnp.allclose(outr, _reference(xr, params), atol=1e-5, rtol=1e-5), \
        "ragged-batch mismatch"

    # 3) bf16 input/weight traffic (f32 accumulation inside the kernel).
    outb = jax.block_until_ready(
        fully_connected_net(x, params, compute_dtype=jnp.bfloat16))
    assert jnp.allclose(outb, ref, atol=2e-2, rtol=2e-2), "bf16 mismatch"

    print("KERNEL_OK")
</pallas_src>

<mosaic_0001>
module attributes {stable_mosaic.version = 11 : i64} {
  func.func @_mlp_kernel(%arg0: i32, %arg1: memref<128x16xf32, #tpu.memory_space<vmem>>, %arg2: memref<16x20xf32, #tpu.memory_space<vmem>>, %arg3: memref<1x20xf32, #tpu.memory_space<vmem>>, %arg4: memref<20x20xf32, #tpu.memory_space<vmem>>, %arg5: memref<1x20xf32, #tpu.memory_space<vmem>>, %arg6: memref<20x8xf32, #tpu.memory_space<vmem>>, %arg7: memref<1x8xf32, #tpu.memory_space<vmem>>, %arg8: memref<8x128xf32, #tpu.memory_space<vmem>>) attributes {dimension_semantics = [#tpu.dimension_semantics<parallel>], iteration_bounds = array<i64: 2>, scalar_prefetch = 0 : i64, scratch_operands = 0 : i64, tpu.core_type = #tpu.core_type<tc>, window_params = [{transform_indices = @transform_0, window_bounds = array<i64: 128, 16>}, {pipeline_mode = #tpu.pipeline_mode<synchronous>, transform_indices = @transform_1, window_bounds = array<i64: 16, 20>}, {pipeline_mode = #tpu.pipeline_mode<synchronous>, transform_indices = @transform_2, window_bounds = array<i64: 1, 20>}, {pipeline_mode = #tpu.pipeline_mode<synchronous>, transform_indices = @transform_3, window_bounds = array<i64: 20, 20>}, {pipeline_mode = #tpu.pipeline_mode<synchronous>, transform_indices = @transform_4, window_bounds = array<i64: 1, 20>}, {pipeline_mode = #tpu.pipeline_mode<synchronous>, transform_indices = @transform_5, window_bounds = array<i64: 20, 8>}, {pipeline_mode = #tpu.pipeline_mode<synchronous>, transform_indices = @transform_6, window_bounds = array<i64: 1, 8>}, {transform_indices = @transform_7, window_bounds = array<i64: 8, 128>}]} {
    %c0 = arith.constant 0 : index
    %c0_0 = arith.constant 0 : index
    %0 = vector.load %arg1[%c0, %c0_0] : memref<128x16xf32, #tpu.memory_space<vmem>>, vector<128x16xf32>
    %c0_1 = arith.constant 0 : index
    %c0_2 = arith.constant 0 : index
    %1 = vector.load %arg2[%c0_1, %c0_2] : memref<16x20xf32, #tpu.memory_space<vmem>>, vector<16x20xf32>
    %cst = arith.constant dense<0.000000e+00> : vector<128x20xf32>
    %2 = tpu.matmul %0, %1, %cst {dimension_numbers = #tpu.dot_dimension_numbers<[1], [0], [0], [1], [0, 0, 1, 1], [], []>} : vector<128x16xf32>, vector<16x20xf32>, vector<128x20xf32> -> vector<128x20xf32>
    %c0_3 = arith.constant 0 : index
    %c0_4 = arith.constant 0 : index
    %3 = vector.load %arg3[%c0_3, %c0_4] : memref<1x20xf32, #tpu.memory_space<vmem>>, vector<1x20xf32>
    %4 = vector.broadcast %3 : vector<1x20xf32> to vector<128x20xf32>
    %5 = arith.addf %2, %4 : vector<128x20xf32>
    %6 = arith.negf %5 : vector<128x20xf32>
    %7 = math.exp %6 : vector<128x20xf32>
    %cst_5 = arith.constant 1.000000e+00 : f32
    %8 = vector.broadcast %cst_5 : f32 to vector<128x20xf32>
    %9 = arith.addf %8, %7 : vector<128x20xf32>
    %10 = arith.divf %8, %9 : vector<128x20xf32>
    %11 = arith.mulf %5, %10 : vector<128x20xf32>
    %c0_6 = arith.constant 0 : index
    %c0_7 = arith.constant 0 : index
    %12 = vector.load %arg4[%c0_6, %c0_7] : memref<20x20xf32, #tpu.memory_space<vmem>>, vector<20x20xf32>
    %cst_8 = arith.constant dense<0.000000e+00> : vector<128x20xf32>
    %13 = tpu.matmul %11, %12, %cst_8 {dimension_numbers = #tpu.dot_dimension_numbers<[1], [0], [0], [1], [0, 0, 1, 1], [], []>} : vector<128x20xf32>, vector<20x20xf32>, vector<128x20xf32> -> vector<128x20xf32>
    %c0_9 = arith.constant 0 : index
    %c0_10 = arith.constant 0 : index
    %14 = vector.load %arg5[%c0_9, %c0_10] : memref<1x20xf32, #tpu.memory_space<vmem>>, vector<1x20xf32>
    %15 = vector.broadcast %14 : vector<1x20xf32> to vector<128x20xf32>
    %16 = arith.addf %13, %15 : vector<128x20xf32>
    %17 = arith.negf %16 : vector<128x20xf32>
    %18 = math.exp %17 : vector<128x20xf32>
    %cst_11 = arith.constant 1.000000e+00 : f32
    %19 = vector.broadcast %cst_11 : f32 to vector<128x20xf32>
    %20 = arith.addf %19, %18 : vector<128x20xf32>
    %21 = arith.divf %19, %20 : vector<128x20xf32>
    %22 = arith.mulf %16, %21 : vector<128x20xf32>
    %c0_12 = arith.constant 0 : index
    %c0_13 = arith.constant 0 : index
    %23 = vector.load %arg6[%c0_12, %c0_13] : memref<20x8xf32, #tpu.memory_space<vmem>>, vector<20x8xf32>
    %cst_14 = arith.constant dense<0.000000e+00> : vector<128x8xf32>
    %24 = tpu.matmul %22, %23, %cst_14 {dimension_numbers = #tpu.dot_dimension_numbers<[1], [0], [0], [1], [0, 0, 1, 1], [], []>} : vector<128x20xf32>, vector<20x8xf32>, vector<128x8xf32> -> vector<128x8xf32>
    %c0_15 = arith.constant 0 : index
    %c0_16 = arith.constant 0 : index
    %25 = vector.load %arg7[%c0_15, %c0_16] : memref<1x8xf32, #tpu.memory_space<vmem>>, vector<1x8xf32>
    %26 = vector.broadcast %25 : vector<1x8xf32> to vector<128x8xf32>
    %27 = arith.addf %24, %26 : vector<128x8xf32>
    %28 = vector.shape_cast %27 : vector<128x8xf32> to vector<8x128xf32>
    %c0_17 = arith.constant 0 : index
    %c0_18 = arith.constant 0 : index
    %29 = vector.load %arg8[%c0_17, %c0_18] : memref<8x128xf32, #tpu.memory_space<vmem>>, vector<8x128xf32>
    tpu.vector_store %arg8[%c0_17, %c0_18], %28 {strides = array<i32>} : memref<8x128xf32, #tpu.memory_space<vmem>>, vector<8x128xf32>,
    return
  }
  func.func @transform_0(%arg0: i32) -> (i32, i32) {
    %c0_i32 = arith.constant 0 : i32
    %c0_i32_0 = arith.constant 0 : i32
    return %arg0, %c0_i32 : i32, i32
  }
  func.func @transform_1(%arg0: i32) -> (i32, i32) {
    %c0_i32 = arith.constant 0 : i32
    %c0_i32_0 = arith.constant 0 : i32
    %c0_i32_1 = arith.constant 0 : i32
    return %c0_i32, %c0_i32_0 : i32, i32
  }
  func.func @transform_2(%arg0: i32) -> (i32, i32) {
    %c0_i32 = arith.constant 0 : i32
    %c0_i32_0 = arith.constant 0 : i32
    %c0_i32_1 = arith.constant 0 : i32
    return %c0_i32, %c0_i32_0 : i32, i32
  }
  func.func @transform_3(%arg0: i32) -> (i32, i32) {
    %c0_i32 = arith.constant 0 : i32
    %c0_i32_0 = arith.constant 0 : i32
    %c0_i32_1 = arith.constant 0 : i32
    return %c0_i32, %c0_i32_0 : i32, i32
  }
  func.func @transform_4(%arg0: i32) -> (i32, i32) {
    %c0_i32 = arith.constant 0 : i32
    %c0_i32_0 = arith.constant 0 : i32
    %c0_i32_1 = arith.constant 0 : i32
    return %c0_i32, %c0_i32_0 : i32, i32
  }
  func.func @transform_5(%arg0: i32) -> (i32, i32) {
    %c0_i32 = arith.constant 0 : i32
    %c0_i32_0 = arith.constant 0 : i32
    %c0_i32_1 = arith.constant 0 : i32
    return %c0_i32, %c0_i32_0 : i32, i32
  }
  func.func @transform_6(%arg0: i32) -> (i32, i32) {
    %c0_i32 = arith.constant 0 : i32
    %c0_i32_0 = arith.constant 0 : i32
    %c0_i32_1 = arith.constant 0 : i32
    return %c0_i32, %c0_i32_0 : i32, i32
  }
  func.func @transform_7(%arg0: i32) -> (i32, i32) {
    %c0_i32 = arith.constant 0 : i32
    %c0_i32_0 = arith.constant 0 : i32
    return %arg0, %c0_i32 : i32, i32
  }
}

module attributes {stable_mosaic.version = 11 : i64} {
  func.func @_mlp_kernel(%arg0: i32, %arg1: memref<128x16xf32, #tpu.memory_space<vmem>>, %arg2: memref<16x20xf32, #tpu.memory_space<vmem>>, %arg3: memref<1x20xf32, #tpu.memory_space<vmem>>, %arg4: memref<20x20xf32, #tpu.memory_space<vmem>>, %arg5: memref<1x20xf32, #tpu.memory_space<vmem>>, %arg6: memref<20x8xf32, #tpu.memory_space<vmem>>, %arg7: memref<1x8xf32, #tpu.memory_space<vmem>>, %arg8: memref<128x8xf32, #tpu.memory_space<vmem>>) attributes {dimension_semantics = [#tpu.dimension_semantics<parallel>], iteration_bounds = array<i64: 2>, scalar_prefetch = 0 : i64, scratch_operands = 0 : i64, tpu.core_type = #tpu.core_type<tc>, window_params = [{transform_indices = @transform_0, window_bounds = array<i64: 128, 16>}, {pipeline_mode = #tpu.pipeline_mode<synchronous>, transform_indices = @transform_1, window_bounds = array<i64: 16, 20>}, {pipeline_mode = #tpu.pipeline_mode<synchronous>, transform_indices = @transform_2, window_bounds = array<i64: 1, 20>}, {pipeline_mode = #tpu.pipeline_mode<synchronous>, transform_indices = @transform_3, window_bounds = array<i64: 20, 20>}, {pipeline_mode = #tpu.pipeline_mode<synchronous>, transform_indices = @transform_4, window_bounds = array<i64: 1, 20>}, {pipeline_mode = #tpu.pipeline_mode<synchronous>, transform_indices = @transform_5, window_bounds = array<i64: 20, 8>}, {pipeline_mode = #tpu.pipeline_mode<synchronous>, transform_indices = @transform_6, window_bounds = array<i64: 1, 8>}, {transform_indices = @transform_7, window_bounds = array<i64: 128, 8>}]} {
    %c0 = arith.constant 0 : index
    %c0_0 = arith.constant 0 : index
    %0 = vector.load %arg1[%c0, %c0_0] : memref<128x16xf32, #tpu.memory_space<vmem>>, vector<128x16xf32>
    %c0_1 = arith.constant 0 : index
    %c0_2 = arith.constant 0 : index
    %1 = vector.load %arg2[%c0_1, %c0_2] : memref<16x20xf32, #tpu.memory_space<vmem>>, vector<16x20xf32>
    %cst = arith.constant dense<0.000000e+00> : vector<128x20xf32>
    %2 = tpu.matmul %0, %1, %cst {dimension_numbers = #tpu.dot_dimension_numbers<[1], [0], [0], [1], [0, 0, 1, 1], [], []>} : vector<128x16xf32>, vector<16x20xf32>, vector<128x20xf32> -> vector<128x20xf32>
    %c0_3 = arith.constant 0 : index
    %c0_4 = arith.constant 0 : index
    %3 = vector.load %arg3[%c0_3, %c0_4] : memref<1x20xf32, #tpu.memory_space<vmem>>, vector<1x20xf32>
    %4 = vector.broadcast %3 : vector<1x20xf32> to vector<128x20xf32>
    %5 = arith.addf %2, %4 : vector<128x20xf32>
    %6 = arith.negf %5 : vector<128x20xf32>
    %7 = math.exp %6 : vector<128x20xf32>
    %cst_5 = arith.constant 1.000000e+00 : f32
    %8 = vector.broadcast %cst_5 : f32 to vector<128x20xf32>
    %9 = arith.addf %8, %7 : vector<128x20xf32>
    %10 = arith.divf %8, %9 : vector<128x20xf32>
    %11 = arith.mulf %5, %10 : vector<128x20xf32>
    %c0_6 = arith.constant 0 : index
    %c0_7 = arith.constant 0 : index
    %12 = vector.load %arg4[%c0_6, %c0_7] : memref<20x20xf32, #tpu.memory_space<vmem>>, vector<20x20xf32>
    %cst_8 = arith.constant dense<0.000000e+00> : vector<128x20xf32>
    %13 = tpu.matmul %11, %12, %cst_8 {dimension_numbers = #tpu.dot_dimension_numbers<[1], [0], [0], [1], [0, 0, 1, 1], [], []>} : vector<128x20xf32>, vector<20x20xf32>, vector<128x20xf32> -> vector<128x20xf32>
    %c0_9 = arith.constant 0 : index
    %c0_10 = arith.constant 0 : index
    %14 = vector.load %arg5[%c0_9, %c0_10] : memref<1x20xf32, #tpu.memory_space<vmem>>, vector<1x20xf32>
    %15 = vector.broadcast %14 : vector<1x20xf32> to vector<128x20xf32>
    %16 = arith.addf %13, %15 : vector<128x20xf32>
    %17 = arith.negf %16 : vector<128x20xf32>
    %18 = math.exp %17 : vector<128x20xf32>
    %cst_11 = arith.constant 1.000000e+00 : f32
    %19 = vector.broadcast %cst_11 : f32 to vector<128x20xf32>
    %20 = arith.addf %19, %18 : vector<128x20xf32>
    %21 = arith.divf %19, %20 : vector<128x20xf32>
    %22 = arith.mulf %16, %21 : vector<128x20xf32>
    %c0_12 = arith.constant 0 : index
    %c0_13 = arith.constant 0 : index
    %23 = vector.load %arg6[%c0_12, %c0_13] : memref<20x8xf32, #tpu.memory_space<vmem>>, vector<20x8xf32>
    %cst_14 = arith.constant dense<0.000000e+00> : vector<128x8xf32>
    %24 = tpu.matmul %22, %23, %cst_14 {dimension_numbers = #tpu.dot_dimension_numbers<[1], [0], [0], [1], [0, 0, 1, 1], [], []>} : vector<128x20xf32>, vector<20x8xf32>, vector<128x8xf32> -> vector<128x8xf32>
    %c0_15 = arith.constant 0 : index
    %c0_16 = arith.constant 0 : index
    %25 = vector.load %arg7[%c0_15, %c0_16] : memref<1x8xf32, #tpu.memory_space<vmem>>, vector<1x8xf32>
    %26 = vector.broadcast %25 : vector<1x8xf32> to vector<128x8xf32>
    %27 = arith.addf %24, %26 : vector<128x8xf32>
    %c0_17 = arith.constant 0 : index
    %c0_18 = arith.constant 0 : index
    %28 = vector.load %arg8[%c0_17, %c0_18] : memref<128x8xf32, #tpu.memory_space<vmem>>, vector<128x8xf32>
    tpu.vector_store %arg8[%c0_17, %c0_18], %27 {strides = array<i32>} : memref<128x8xf32, #tpu.memory_space<vmem>>, vector<128x8xf32>,
    return
  }
  func.func @transform_0(%arg0: i32) -> (i32, i32) {
    %c0_i32 = arith.constant 0 : i32
    %c0_i32_0 = arith.constant 0 : i32
    return %arg0, %c0_i32 : i32, i32
  }
  func.func @transform_1(%arg0: i32) -> (i32, i32) {
    %c0_i32 = arith.constant 0 : i32
    %c0_i32_0 = arith.constant 0 : i32
    %c0_i32_1 = arith.constant 0 : i32
    return %c0_i32, %c0_i32_0 : i32, i32
  }
  func.func @transform_2(%arg0: i32) -> (i32, i32) {
    %c0_i32 = arith.constant 0 : i32
    %c0_i32_0 = arith.constant 0 : i32
    %c0_i32_1 = arith.constant 0 : i32
    return %c0_i32, %c0_i32_0 : i32, i32
  }
  func.func @transform_3(%arg0: i32) -> (i32, i32) {
    %c0_i32 = arith.constant 0 : i32
    %c0_i32_0 = arith.constant 0 : i32
    %c0_i32_1 = arith.constant 0 : i32
    return %c0_i32, %c0_i32_0 : i32, i32
  }
  func.func @transform_4(%arg0: i32) -> (i32, i32) {
    %c0_i32 = arith.constant 0 : i32
    %c0_i32_0 = arith.constant 0 : i32
    %c0_i32_1 = arith.constant 0 : i32
    return %c0_i32, %c0_i32_0 : i32, i32
  }
  func.func @transform_5(%arg0: i32) -> (i32, i32) {
    %c0_i32 = arith.constant 0 : i32
    %c0_i32_0 = arith.constant 0 : i32
    %c0_i32_1 = arith.constant 0 : i32
    return %c0_i32, %c0_i32_0 : i32, i32
  }
  func.func @transform_6(%arg0: i32) -> (i32, i32) {
    %c0_i32 = arith.constant 0 : i32
    %c0_i32_0 = arith.constant 0 : i32
    %c0_i32_1 = arith.constant 0 : i32
    return %c0_i32, %c0_i32_0 : i32, i32
  }
  func.func @transform_7(%arg0: i32) -> (i32, i32) {
    %c0_i32 = arith.constant 0 : i32
    %c0_i32_0 = arith.constant 0 : i32
    return %arg0, %c0_i32 : i32, i32
  }
}

</mosaic_0001>

<bundles_post_ra>
// kernel: tpu_custom_call.1
= control target key start
LH: loop header
LB: loop body
LE: loop exit
PB: predicated region body
PF: predicated region fallthrough
CT: control target
= control target key end

     0   :  { %s1650_s24 = smov 0   ;;  %s1929_s0 = inlined_call_operand.vmem [shape: f32[256,16], index: 0, kind: input, shape index: {}]   ;;  %s1930_s1 = inlined_call_operand.vmem [shape: f32[16,20], index: 1, kind: input, shape index: {}]   ;;  %s1931_s2 = inlined_call_operand.vmem [shape: f32[1,20], index: 2, kind: input, shape index: {}]   ;;  %s1932_s3 = inlined_call_operand.vmem [shape: f32[20,20], index: 3, kind: input, shape index: {}]   ;;  %s1933_s4 = inlined_call_operand.vmem [shape: f32[1,20], index: 4, kind: input, shape index: {}]   ;;  %s1934_s5 = inlined_call_operand.vmem [shape: f32[20,8], index: 5, kind: input, shape index: {}]   ;;  %s1935_s6 = inlined_call_operand.vmem [shape: f32[1,8], index: 6, kind: input, shape index: {}]   ;;  %s1936_s7 = inlined_call_operand.vmem [shape: f32[256,8], index: 7, kind: output, shape index: {}]  }
   0x1 LB: > { %s1212_s25 = sadd.s32 4294967295, %s1608_s24   ;;  %p1216_p0 = scmp.ge.s32.totalorder %s1608_s24, 1  ;;  %s1608_s24 = sphi %s1650_s24, %s17_s24  }
   0x2   : > { %p238_p1 = scmp.lt.s32.totalorder %s1608_s24, 3 }
   0x4   : > { %p239_p2 = pnand %p1216_p0, %p238_p1 }
   0x5   : > { %v298_v0 = vld [vmem:[%s1930_s1] sm:$0xff] (!%p239_p2)  ;;  %v299_v1 = vld [vmem:[%s1930_s1 + $0x8] sm:$0xff] (!%p239_p2)  ;;  %s1217_s30 = sshll.u32 (!%p239_p2), %s1212_s25, 4  ;;  %vm307_vm0 = vcmask (!%p239_p2), 130048   ;;  %v615_v22 = vld [vmem:[%s1932_s3 + $0x10] sm:$0xf] (!%p239_p2) }
   0x6   : > { %242 = sbr.rel (%p239_p2) target bundleno = 764 (0x2fc), region = 48  ;;  %v1452_v2 = vpack.c.bf16 (!%p239_p2), %v299_v1, %v298_v0  ;;  %p271_p3 = scmp.lt.s32.totalorder (!%p239_p2), %s1217_s30, 31  ;;  %v613_v19 = vld [vmem:[%s1932_s3] sm:$0xff] (!%p239_p2)  ;;  %v614_v20 = vld [vmem:[%s1932_s3 + $0x8] sm:$0xff] (!%p239_p2)  ;;  %vm672_vm1 = vcmask (!%p239_p2), 1043456   ;;  %vm623_vm2 = vcmask (!%p239_p2), 162816  }
   0x7   : > { %v1456_v21 = vpack.c.bf16 (!%p239_p2), %v614_v20, %v613_v19  ;;  %v1702_v23 = vld [vmem:[%s1931_s2] ss:$0 sm:$0xff] (!%p239_p2)  ;;  %vm1139_vm3 = vcmask (!%p239_p2), 64512  }
   0x8   : > { %1453 = vmatprep.subr.bf16.mxu0 (!%p239_p2), %v1452_v2  ;;  %1464 = vmatprep.subr.bf16.mxu1 (!%p239_p2), %v1452_v2 }
   0x9   : > { %1455 = vmatpush3.bf16.msra.mxu0 (!%p239_p2), %v1452_v2  ;;  %1465 = vmatpush3.bf16.msra.mxu1 (!%p239_p2), %v1452_v2 }
   0xa   : > { %1457 = vmatprep.subr.bf16.mxu1 (!%p239_p2), %v1456_v21 }
   0xd   : > { %s1938_s30 = smov (!%p271_p3, %s1217_s30), 31 }
   0xe   : > { %s1218_s8 = sshll.u32 %s1938_s30, 3 }
   0xf   : > { %s274_s11 = scalar_lea.vmem %s1929_s0, %s1218_s8  ;;  %s1892_s12 = scalar_lea.vmem %s1936_s7, %s1218_s8 }
  0x10   : > { %v282_v3 = vld [vmem:[%s274_s11] sm:$0xff]  ;;  %v283_v5 = vld [vmem:[%s274_s11 + $0x8] sm:$0xff]  ;;  %v284_v7 = vld [vmem:[%s274_s11 + $0x10] sm:$0xff] }
  0x11   : > { %v290_v4 = vld [vmem:[%s274_s11 + $0x40] sm:$0xff]  ;;  %1368 = vmatprep.mubr.msk.f32.mxu0 %vm307_vm0, %v282_v3  ;;  %v291_v6 = vld [vmem:[%s274_s11 + $0x48] sm:$0xff]  ;;  %v292_v8 = vld [vmem:[%s274_s11 + $0x50] sm:$0xff] }
  0x12   : > { %1380 = vmatprep.mubr.msk.f32.mxu1 %vm307_vm0, %v290_v4  ;;  %1369 = vmatmul.mubr.msk.f32.vlgmr.msra.gmra.mrb[0].mxu0 %vm307_vm0, %v283_v5  ;;  %v285_v9 = vld [vmem:[%s274_s11 + $0x18] sm:$0xff]  ;;  %v286_v11 = vld [vmem:[%s274_s11 + $0x20] sm:$0xff]  ;;  %v287_v13 = vld [vmem:[%s274_s11 + $0x28] sm:$0xff] }
  0x13   : > { %1381 = vmatmul.mubr.msk.f32.vlgmr.msra.gmra.mrb[0].mxu1 %vm307_vm0, %v291_v6  ;;  %1371 = vmatprep.mubr.msk.f32.mxu0 %vm307_vm0, %v284_v7  ;;  %v293_v10 = vld [vmem:[%s274_s11 + $0x58] sm:$0xff]  ;;  %v294_v12 = vld [vmem:[%s274_s11 + $0x60] sm:$0xff]  ;;  %v295_v14 = vld [vmem:[%s274_s11 + $0x68] sm:$0xff] }
  0x14   : > { %1383 = vmatprep.mubr.msk.f32.mxu1 %vm307_vm0, %v292_v8  ;;  %v288_v15 = vld [vmem:[%s274_s11 + $0x30] sm:$0xff]  ;;  %v289_v17 = vld [vmem:[%s274_s11 + $0x38] sm:$0xff]  ;;  %1459 = vmatpush3.bf16.msra.mxu1 %v1456_v21 }
  0x15   : > { %v296_v16 = vld [vmem:[%s274_s11 + $0x70] sm:$0xff]  ;;  %v297_v18 = vld [vmem:[%s274_s11 + $0x78] sm:$0xff]  ;;  %1396 = vmatprep.subr.msk.mxu1 %vm672_vm1, %v615_v22 }
  0x16   : > { %1372 = vmatmul.mubr.msk.f32.gmra.mrb[2].mxu0 %vm307_vm0, %v285_v9 }
  0x17   : > { %1384 = vmatmul.mubr.msk.f32.gmra.mrb[2].mxu1 %vm307_vm0, %v293_v10  ;;  %1374 = vmatprep.mubr.msk.f32.mxu0 %vm307_vm0, %v286_v11 }
  0x18   : > { %1386 = vmatprep.mubr.msk.f32.mxu1 %vm307_vm0, %v294_v12  ;;  %1397 = vmatpush3.msk.msra.mxu1 %vm672_vm1, %v615_v22 }
  0x1a   : > { %1375 = vmatmul.mubr.msk.f32.gmra.mrb[4].mxu0 %vm307_vm0, %v287_v13 }
  0x1b   : > { %1387 = vmatmul.mubr.msk.f32.gmra.mrb[4].mxu1 %vm307_vm0, %v295_v14  ;;  %1377 = vmatprep.mubr.msk.f32.mxu0 %vm307_vm0, %v288_v15 }
  0x1c   : > { %1389 = vmatprep.mubr.msk.f32.mxu1 %vm307_vm0, %v296_v16 }
  0x1e   : > { %1378 = vmatmul.mubr.msk.f32.gmra.mrb[6].mxu0 %vm307_vm0, %v289_v17 }
  0x1f   : > { %1390 = vmatmul.mubr.msk.f32.gmra.mrb[6].mxu1 %vm307_vm0, %v297_v18 }
  0xe5   : > { %v1370_v24 = vpop.f32.mrb[0].mxu0 }
  0xe6   : > { %v1382_v25 = vpop.f32.mrb[0].mxu1  ;;  %v1705_v26 = vadd.f32 %v1370_v24, %v1702_v23  ;;  %v422_v27 = vpop.f32.mrb[1].mxu0 }
  0xe7   : > { %v462_v28 = vpop.f32.mrb[1].mxu1  ;;  %v1708_v29 = vadd.f32 %v1702_v23, %v422_v27  ;;  %v1736_v62 = vadd.f32 %v1382_v25, %v1702_v23 }
  0xe8   : > { %v1239_v30 = vmul.f32 -1.442695, %v1705_v26  ;;  %v1729_v55 = vadd.f32 %v1702_v23, %v462_v28 }
  0xe9   : > { %v1238_v31 = vmul.f32 -1.442695, %v1708_v29  ;;  %v1373_v32 = vpop.f32.mrb[2].mxu0  ;;  %v1247_v6 = vmul.f32 -1.442695, %v1736_v62 }
  0xea   : > { %v1385_v33 = vpop.f32.mrb[2].mxu1  ;;  %1474 = vpow2.f32 %v1239_v30  ;;  %v1713_v34 = vadd.f32 %v1373_v32, %v1702_v23  ;;  %v432_v35 = vpop.f32.mrb[3].mxu0  ;;  %v1246_v61 = vmul.f32 -1.442695, %v1729_v55 }
  0xeb   : > { %v472_v36 = vpop.f32.mrb[3].mxu1  ;;  %v1716_v37 = vadd.f32 %v1702_v23, %v432_v35  ;;  %1476 = vpow2.f32 %v1238_v31  ;;  %v1747_v8 = vadd.f32 %v1385_v33, %v1702_v23 }
  0xec   : > { %v1241_v38 = vmul.f32 -1.442695, %v1713_v34  ;;  %v1740_v2 = vadd.f32 %v1702_v23, %v472_v36 }
  0xed   : > { %v1240_v39 = vmul.f32 -1.442695, %v1716_v37  ;;  %v1376_v40 = vpop.f32.mrb[4].mxu0  ;;  %v1249_v15 = vmul.f32 -1.442695, %v1747_v8 }
  0xee   : > { %v1388_v41 = vpop.f32.mrb[4].mxu1  ;;  %1478 = vpow2.f32 %v1241_v38  ;;  %v1721_v42 = vadd.f32 %v1376_v40, %v1702_v23  ;;  %v442_v43 = vpop.f32.mrb[5].mxu0  ;;  %v1248_v9 = vmul.f32 -1.442695, %v1740_v2 }
  0xef   : > { %v482_v44 = vpop.f32.mrb[5].mxu1  ;;  %v1724_v45 = vadd.f32 %v1702_v23, %v442_v43  ;;  %1480 = vpow2.f32 %v1240_v39  ;;  %v1757_v16 = vadd.f32 %v1388_v41, %v1702_v23 }
  0xf0   : > { %v1243_v46 = vmul.f32 -1.442695, %v1721_v42  ;;  %v1751_v10 = vadd.f32 %v1702_v23, %v482_v44 }
  0xf1   : > { %v1242_v47 = vmul.f32 -1.442695, %v1724_v45  ;;  %v1379_v48 = vpop.f32.mrb[6].mxu0  ;;  %v1251_v25 = vmul.f32 -1.442695, %v1757_v16 }
  0xf2   : > { %v1391_v49 = vpop.f32.mrb[6].mxu1  ;;  %1482 = vpow2.f32 %v1243_v46  ;;  %v452_v50 = vpop.f32.mrb[7].mxu0  ;;  %v1732_v57 = vadd.f32 %v1379_v48, %v1702_v23  ;;  %v1250_v18 = vmul.f32 -1.442695, %v1751_v10 }
  0xf3   : > { %v492_v51 = vpop.f32.mrb[7].mxu1  ;;  %1484 = vpow2.f32 %v1242_v47  ;;  %v1743_v4 = vadd.f32 %v1702_v23, %v452_v50 }
  0xf4   : > { %v1475_v52 = vpop.eup %1474  ;;  %v1245_v0 = vmul.f32 -1.442695, %v1732_v57  ;;  %v1762_v19 = vadd.f32 %v1702_v23, %v492_v51 }
  0xf5   : > { %v550_v53 = vadd.f32 1.0, %v1475_v52  ;;  %v1477_v54 = vpop.eup %1476  ;;  %v1244_v11 = vmul.f32 -1.442695, %v1743_v4 }
  0xf6   : > { %v549_v56 = vadd.f32 1.0, %v1477_v54 }
  0xf7   : > { %1486 = vrcp.f32 %v550_v53 }
  0xf8   : > { %v1479_v58 = vpop.eup %1478  ;;  %1488 = vrcp.f32 %v549_v56 }
  0xf9   : > { %v552_v59 = vadd.f32 1.0, %v1479_v58  ;;  %v1481_v60 = vpop.eup %1480 }
  0xfa   : > { %v551_v63 = vadd.f32 1.0, %v1481_v60 }
  0xfb   : > { %1490 = vrcp.f32 %v552_v59 }
  0xfc   : > { %v1483_v1 = vpop.eup %1482  ;;  %1492 = vrcp.f32 %v551_v63 }
  0xfd   : > { %v554_v3 = vadd.f32 1.0, %v1483_v1  ;;  %v1485_v5 = vpop.eup %1484  ;;  %1494 = vpow2.f32 %v1246_v61 }
  0xfe   : > { %v553_v7 = vadd.f32 1.0, %v1485_v5  ;;  %1496 = vpow2.f32 %v1245_v0 }
  0xff   : > { %1498 = vrcp.f32 %v554_v3 }
 0x100   : > { %1500 = vrcp.f32 %v553_v7 }
 0x101   : > { %v1487_v12 = vpop.eup %1486  ;;  %1502 = vpow2.f32 %v1247_v6 }
 0x102   : > { %v1489_v13 = vpop.eup %1488  ;;  %1504 = vpow2.f32 %v1248_v9  ;;  %v598_v17 = vmul.f32 %v1487_v12, %v1705_v26  ;;  %v1769_v26 = vadd.f32 %v1391_v49, %v1702_v23  ;;  %v934_v9 = vld [vmem:[%s1934_s5 + $0x8] sm:$0xff]  ;;  %v1814_v12 = vld [vmem:[%s1933_s4] ss:$0 sm:$0xff] }
 0x103   : > { %v597_v14 = vmul.f32 %v1489_v13, %v1708_v29  ;;  %1506 = vpow2.f32 %v1244_v11  ;;  %v1252_v29 = vmul.f32 -1.442695, %v1762_v19  ;;  %v935_v11 = vld [vmem:[%s1934_s5 + $0x10] sm:$0xf] }
 0x104   : > { %1508 = vpow2.f32 %v1249_v15  ;;  %v1253_v35 = vmul.f32 -1.442695, %v1769_v26 }
 0x105   : > { %v1491_v20 = vpop.eup %1490  ;;  %1398 = vmatprep.mubr.msk.f32.mxu1 %vm623_vm2, %v597_v14  ;;  %1510 = vpow2.f32 %v1250_v18 }
 0x106   : > { %v1493_v21 = vpop.eup %1492  ;;  %1399 = vmatmul.mubr.msk.f32.vlgmr.msra.gmra.mrb[8].mxu1 %vm623_vm2, %v598_v17  ;;  %v600_v28 = vmul.f32 %v1491_v20, %v1713_v34  ;;  %1512 = vpow2.f32 %v1251_v25 }
 0x107   : > { %v1495_v22 = vpop.eup %1494  ;;  %v599_v24 = vmul.f32 %v1493_v21, %v1716_v37  ;;  %1514 = vpow2.f32 %v1252_v29 }
 0x108   : > { %v1497_v27 = vpop.eup %1496  ;;  %v557_v32 = vadd.f32 1.0, %v1495_v22 }
 0x109   : > { %v1499_v30 = vpop.eup %1498  ;;  %1401 = vmatprep.mubr.msk.f32.mxu1 %vm623_vm2, %v599_v24  ;;  %v556_v37 = vadd.f32 1.0, %v1497_v27 }
 0x10a   : > { %v1501_v31 = vpop.eup %1500  ;;  %1402 = vmatmul.mubr.msk.f32.gmra.mrb[10].mxu1 %vm623_vm2, %v600_v28  ;;  %v602_v36 = vmul.f32 %v1499_v30, %v1721_v42  ;;  %1516 = vrcp.f32 %v557_v32 }
 0x10b   : > { %v601_v33 = vmul.f32 %v1501_v31, %v1724_v45  ;;  %v1503_v23 = vpop.eup %1502  ;;  %1518 = vpow2.f32 %v1253_v35 }
 0x10c   : > { %v1505_v34 = vpop.eup %1504  ;;  %v558_v40 = vadd.f32 1.0, %v1503_v23  ;;  %1520 = vrcp.f32 %v556_v37 }
 0x10d   : > { %1404 = vmatprep.mubr.msk.f32.mxu1 %vm623_vm2, %v601_v33  ;;  %v1507_v38 = vpop.eup %1506  ;;  %v559_v43 = vadd.f32 1.0, %v1505_v34 }
 0x10e   : > { %1405 = vmatmul.mubr.msk.f32.gmra.mrb[12].mxu1 %vm623_vm2, %v602_v36  ;;  %v555_v39 = vadd.f32 1.0, %v1507_v38  ;;  %v1509_v41 = vpop.eup %1508 }
 0x10f   : > { %v1511_v44 = vpop.eup %1510  ;;  %v560_v45 = vadd.f32 1.0, %v1509_v41 }
 0x110   : > { %1522 = vrcp.f32 %v555_v39  ;;  %v1513_v42 = vpop.eup %1512  ;;  %v561_v46 = vadd.f32 1.0, %v1511_v44 }
 0x111   : > { %1524 = vrcp.f32 %v558_v40  ;;  %v1515_v47 = vpop.eup %1514  ;;  %v562_v49 = vadd.f32 1.0, %v1513_v42 }
 0x112   : > { %1526 = vrcp.f32 %v559_v43  ;;  %v563_v51 = vadd.f32 1.0, %v1515_v47 }
 0x113   : > { %1528 = vrcp.f32 %v560_v45 }
 0x114   : > { %v1517_v48 = vpop.eup %1516  ;;  %1530 = vrcp.f32 %v561_v46 }
 0x115   : > { %v1519_v50 = vpop.eup %1518  ;;  %1532 = vrcp.f32 %v562_v49  ;;  %v605_v60 = vmul.f32 %v1517_v48, %v1729_v55 }
 0x116   : > { %v1521_v52 = vpop.eup %1520  ;;  %v564_v54 = vadd.f32 1.0, %v1519_v50  ;;  %1534 = vrcp.f32 %v563_v51 }
 0x117   : > { %v604_v58 = vmul.f32 %v1521_v52, %v1732_v57 }
 0x118   : > { %1536 = vrcp.f32 %v564_v54 }
 0x11a   : > { %v1523_v53 = vpop.eup %1522 }
 0x11b   : > { %v603_v56 = vmul.f32 %v1523_v53, %v1743_v4  ;;  %v1525_v59 = vpop.eup %1524 }
 0x11c   : > { %v1527_v61 = vpop.eup %1526  ;;  %v606_v63 = vmul.f32 %v1525_v59, %v1736_v62 }
 0x11d   : > { %1407 = vmatprep.mubr.msk.f32.mxu1 %vm623_vm2, %v603_v56  ;;  %v1529_v0 = vpop.eup %1528  ;;  %v607_v1 = vmul.f32 %v1527_v61, %v1740_v2 }
 0x11e   : > { %1408 = vmatmul.mubr.msk.f32.gmra.mrb[14].mxu1 %vm623_vm2, %v604_v58  ;;  %v1531_v3 = vpop.eup %1530  ;;  %v608_v55 = vmul.f32 %v1529_v0, %v1747_v8  ;;  %v933_v8 = vld [vmem:[%s1934_s5] sm:$0xff] }
 0x11f   : > { %1410 = vmatprep.mubr.msk.f32.mxu1 %vm623_vm2, %v605_v60  ;;  %v1533_v57 = vpop.eup %1532  ;;  %v609_v4 = vmul.f32 %v1531_v3, %v1751_v10  ;;  %v1460_v10 = vpack.c.bf16 %v934_v9, %v933_v8 }
 0x120   : > { %v1535_v5 = vpop.eup %1534  ;;  %v610_v62 = vmul.f32 %v1533_v57, %v1757_v16 }
 0x121   : > { %v611_v2 = vmul.f32 %v1535_v5, %v1762_v19  ;;  %1461 = vmatprep.subr.bf16.mxu0 %v1460_v10 }
 0x122   : > { %1411 = vmatmul.mubr.msk.f32.gmra.mrb[16].mxu1 %vm623_vm2, %v606_v63  ;;  %v1537_v6 = vpop.eup %1536  ;;  %1463 = vmatpush3.bf16.msra.mxu0 %v1460_v10 }
 0x123   : > { %1413 = vmatprep.mubr.msk.f32.mxu1 %vm623_vm2, %v607_v1  ;;  %v612_v7 = vmul.f32 %v1537_v6, %v1769_v26  ;;  %1426 = vmatprep.subr.msk.mxu0 %vm672_vm1, %v935_v11 }
 0x126   : > { %1414 = vmatmul.mubr.msk.f32.gmra.mrb[18].mxu1 %vm623_vm2, %v608_v55  ;;  %1427 = vmatpush3.msk.msra.mxu0 %vm672_vm1, %v935_v11 }
 0x127   : > { %1416 = vmatprep.mubr.msk.f32.mxu1 %vm623_vm2, %v609_v4 }
 0x12a   : > { %1417 = vmatmul.mubr.msk.f32.gmra.mrb[20].mxu1 %vm623_vm2, %v610_v62 }
 0x12b   : > { %1419 = vmatprep.mubr.msk.f32.mxu1 %vm623_vm2, %v611_v2 }
 0x12e   : > { %1420 = vmatmul.mubr.msk.f32.gmra.mrb[22].mxu1 %vm623_vm2, %v612_v7 }
 0x1d9   : > { %v1400_v13 = vpop.f32.mrb[8].mxu1 }
 0x1da   : > { %v748_v14 = vadd.f32 %v1400_v13, %v1814_v12  ;;  %v742_v15 = vpop.f32.mrb[9].mxu1 }
 0x1db   : > { %v743_v16 = vadd.f32 %v1814_v12, %v742_v15 }
 0x1dc   : > { %v1273_v17 = vmul.f32 -1.442695, %v748_v14 }
 0x1dd   : > { %v1272_v18 = vmul.f32 -1.442695, %v743_v16  ;;  %v1403_v19 = vpop.f32.mrb[10].mxu1 }
 0x1de   : > { %1538 = vpow2.f32 %v1273_v17  ;;  %v758_v20 = vadd.f32 %v1403_v19, %v1814_v12  ;;  %v752_v21 = vpop.f32.mrb[11].mxu1 }
 0x1df   : > { %1540 = vpow2.f32 %v1272_v18  ;;  %v753_v22 = vadd.f32 %v1814_v12, %v752_v21 }
 0x1e0   : > { %v1275_v24 = vmul.f32 -1.442695, %v758_v20 }
 0x1e1   : > { %v1274_v25 = vmul.f32 -1.442695, %v753_v22  ;;  %v1406_v26 = vpop.f32.mrb[12].mxu1 }
 0x1e2   : > { %1542 = vpow2.f32 %v1275_v24  ;;  %v1821_v27 = vadd.f32 %v1406_v26, %v1814_v12  ;;  %v762_v28 = vpop.f32.mrb[13].mxu1 }
 0x1e3   : > { %1544 = vpow2.f32 %v1274_v25  ;;  %v763_v29 = vadd.f32 %v1814_v12, %v762_v28 }
 0x1e4   : > { %v1277_v30 = vmul.f32 -1.442695, %v1821_v27 }
 0x1e5   : > { %v1276_v31 = vmul.f32 -1.442695, %v763_v29 }
 0x1e6   : > { %1546 = vpow2.f32 %v1277_v30 }
 0x1e7   : > { %1548 = vpow2.f32 %v1276_v31 }
 0x1e8   : > { %v1539_v32 = vpop.eup %1538 }
 0x1e9   : > { %v1541_v33 = vpop.eup %1540  ;;  %v870_v35 = vadd.f32 1.0, %v1539_v32 }
 0x1ea   : > { %v869_v23 = vadd.f32 1.0, %v1541_v33 }
 0x1eb   : > { %1550 = vrcp.f32 %v870_v35 }
 0x1ec   : > { %v1543_v36 = vpop.eup %1542  ;;  %1552 = vrcp.f32 %v869_v23 }
 0x1ed   : > { %v1545_v37 = vpop.eup %1544  ;;  %v872_v34 = vadd.f32 1.0, %v1543_v36 }
 0x1ee   : > { %v871_v38 = vadd.f32 1.0, %v1545_v37 }
 0x1ef   : > { %1554 = vrcp.f32 %v872_v34 }
 0x1f0   : > { %v1547_v39 = vpop.eup %1546  ;;  %1556 = vrcp.f32 %v871_v38 }
 0x1f1   : > { %v1549_v40 = vpop.eup %1548  ;;  %v874_v41 = vadd.f32 1.0, %v1547_v39  ;;  %v1409_v44 = vpop.f32.mrb[14].mxu1 }
 0x1f2   : > { %v873_v43 = vadd.f32 1.0, %v1549_v40  ;;  %v1826_v45 = vadd.f32 %v1409_v44, %v1814_v12  ;;  %v772_v42 = vpop.f32.mrb[15].mxu1 }
 0x1f3   : > { %1558 = vrcp.f32 %v874_v41  ;;  %v1829_v46 = vadd.f32 %v1814_v12, %v772_v42 }
 0x1f4   : > { %1560 = vrcp.f32 %v873_v43  ;;  %v1279_v48 = vmul.f32 -1.442695, %v1826_v45 }
 0x1f5   : > { %v1551_v47 = vpop.eup %1550  ;;  %v1278_v50 = vmul.f32 -1.442695, %v1829_v46  ;;  %v1412_v51 = vpop.f32.mrb[16].mxu1 }
 0x1f6   : > { %v1553_v49 = vpop.eup %1552  ;;  %1562 = vpow2.f32 %v1279_v48  ;;  %v1834_v53 = vadd.f32 %v1412_v51, %v1814_v12  ;;  %v782_v54 = vpop.f32.mrb[17].mxu1  ;;  %v918_v56 = vmul.f32 %v1551_v47, %v748_v14 }
 0x1f7   : > { %v917_v52 = vmul.f32 %v1553_v49, %v743_v16  ;;  %1564 = vpow2.f32 %v1278_v50  ;;  %v1837_v58 = vadd.f32 %v1814_v12, %v782_v54 }
 0x1f8   : > { %v1281_v60 = vmul.f32 -1.442695, %v1834_v53 }
 0x1f9   : > { %v1555_v59 = vpop.eup %1554  ;;  %1428 = vmatprep.mubr.msk.f32.mxu0 %vm623_vm2, %v917_v52  ;;  %v1280_v63 = vmul.f32 -1.442695, %v1837_v58  ;;  %v1415_v0 = vpop.f32.mrb[18].mxu1 }
 0x1fa   : > { %v1557_v61 = vpop.eup %1556  ;;  %1429 = vmatmul.mubr.msk.f32.vlgmr.msra.gmra.mrb[8].mxu0 %vm623_vm2, %v918_v56  ;;  %1566 = vpow2.f32 %v1281_v60  ;;  %v1844_v3 = vadd.f32 %v1415_v0, %v1814_v12  ;;  %v792_v55 = vpop.f32.mrb[19].mxu1  ;;  %v920_v57 = vmul.f32 %v1555_v59, %v758_v20  ;;  %v1288_v0 = vld [vmem:[%s1935_s6] ss:$0 sm:$0xff] }
 0x1fb   : > { %v919_v1 = vmul.f32 %v1557_v61, %v753_v22  ;;  %1568 = vpow2.f32 %v1280_v63  ;;  %v1847_v4 = vadd.f32 %v1814_v12, %v792_v55 }
 0x1fc   : > { %v1283_v62 = vmul.f32 -1.442695, %v1844_v3 }
 0x1fd   : > { %v1559_v5 = vpop.eup %1558  ;;  %1431 = vmatprep.mubr.msk.f32.mxu0 %vm623_vm2, %v919_v1  ;;  %v1282_v2 = vmul.f32 -1.442695, %v1847_v4  ;;  %v1418_v7 = vpop.f32.mrb[20].mxu1 }
 0x1fe   : > { %v1561_v6 = vpop.eup %1560  ;;  %1432 = vmatmul.mubr.msk.f32.gmra.mrb[10].mxu0 %vm623_vm2, %v920_v57  ;;  %1570 = vpow2.f32 %v1283_v62  ;;  %v1854_v9 = vadd.f32 %v1418_v7, %v1814_v12  ;;  %v802_v10 = vpop.f32.mrb[21].mxu1  ;;  %v922_v11 = vmul.f32 %v1559_v5, %v1821_v27 }
 0x1ff   : > { %v921_v8 = vmul.f32 %v1561_v6, %v763_v29  ;;  %1572 = vpow2.f32 %v1282_v2  ;;  %v1858_v13 = vadd.f32 %v1814_v12, %v802_v10 }
 0x200   : > { %v1563_v14 = vpop.eup %1562  ;;  %v1285_v15 = vmul.f32 -1.442695, %v1854_v9 }
 0x201   : > { %1434 = vmatprep.mubr.msk.f32.mxu0 %vm623_vm2, %v921_v8  ;;  %v1565_v16 = vpop.eup %1564  ;;  %v876_v17 = vadd.f32 1.0, %v1563_v14  ;;  %v1284_v18 = vmul.f32 -1.442695, %v1858_v13  ;;  %v1421_v19 = vpop.f32.mrb[22].mxu1 }
 0x202   : > { %1435 = vmatmul.mubr.msk.f32.gmra.mrb[12].mxu0 %vm623_vm2, %v922_v11  ;;  %v875_v20 = vadd.f32 1.0, %v1565_v16  ;;  %1574 = vpow2.f32 %v1285_v15  ;;  %v818_v21 = vadd.f32 %v1421_v19, %v1814_v12  ;;  %v812_v22 = vpop.f32.mrb[23].mxu1 }
 0x203   : > { %1576 = vrcp.f32 %v876_v17  ;;  %v813_v24 = vadd.f32 %v1814_v12, %v812_v22 }
 0x204   : > { %v1567_v25 = vpop.eup %1566  ;;  %1578 = vrcp.f32 %v875_v20  ;;  %v1287_v26 = vmul.f32 -1.442695, %v818_v21 }
 0x205   : > { %v1569_v27 = vpop.eup %1568  ;;  %v878_v28 = vadd.f32 1.0, %v1567_v25  ;;  %1580 = vpow2.f32 %v1284_v18  ;;  %v1286_v29 = vmul.f32 -1.442695, %v813_v24 }
 0x206   : > { %v877_v30 = vadd.f32 1.0, %v1569_v27  ;;  %1582 = vpow2.f32 %v1287_v26 }
 0x207   : > { %1584 = vrcp.f32 %v878_v28 }
 0x208   : > { %v1571_v31 = vpop.eup %1570  ;;  %1586 = vrcp.f32 %v877_v30 }
 0x209   : > { %v1573_v32 = vpop.eup %1572  ;;  %v880_v33 = vadd.f32 1.0, %v1571_v31  ;;  %1588 = vpow2.f32 %v1286_v29 }
 0x20a   : > { %v879_v35 = vadd.f32 1.0, %v1573_v32 }
 0x20b   : > { %1590 = vrcp.f32 %v880_v33 }
 0x20c   : > { %v1575_v23 = vpop.eup %1574  ;;  %1592 = vrcp.f32 %v879_v35 }
 0x20d   : > { %v1577_v12 = vpop.eup %1576  ;;  %v882_v36 = vadd.f32 1.0, %v1575_v23 }
 0x20e   : > { %v1579_v37 = vpop.eup %1578  ;;  %v924_v40 = vmul.f32 %v1577_v12, %v1826_v45 }
 0x20f   : > { %v1581_v34 = vpop.eup %1580  ;;  %v923_v38 = vmul.f32 %v1579_v37, %v1829_v46  ;;  %1594 = vrcp.f32 %v882_v36 }
 0x210   : > { %v1583_v39 = vpop.eup %1582  ;;  %v881_v41 = vadd.f32 1.0, %v1581_v34 }
 0x211   : > { %v1585_v43 = vpop.eup %1584  ;;  %v884_v44 = vadd.f32 1.0, %v1583_v39  ;;  %1437 = vmatprep.mubr.msk.f32.mxu0 %vm623_vm2, %v923_v38 }
 0x212   : > { %v1587_v42 = vpop.eup %1586  ;;  %1596 = vrcp.f32 %v881_v41  ;;  %1438 = vmatmul.mubr.msk.f32.gmra.mrb[14].mxu0 %vm623_vm2, %v924_v40  ;;  %v926_v49 = vmul.f32 %v1585_v43, %v1834_v53 }
 0x213   : > { %v1589_v47 = vpop.eup %1588  ;;  %v925_v48 = vmul.f32 %v1587_v42, %v1837_v58  ;;  %1598 = vrcp.f32 %v884_v44 }
 0x214   : > { %v883_v50 = vadd.f32 1.0, %v1589_v47 }
 0x215   : > { %v1591_v46 = vpop.eup %1590  ;;  %1440 = vmatprep.mubr.msk.f32.mxu0 %vm623_vm2, %v925_v48 }
 0x216   : > { %v1593_v45 = vpop.eup %1592  ;;  %1600 = vrcp.f32 %v883_v50  ;;  %1441 = vmatmul.mubr.msk.f32.gmra.mrb[16].mxu0 %vm623_vm2, %v926_v49  ;;  %v928_v52 = vmul.f32 %v1591_v46, %v1844_v3 }
 0x217   : > { %v927_v51 = vmul.f32 %v1593_v45, %v1847_v4 }
 0x219   : > { %1443 = vmatprep.mubr.msk.f32.mxu0 %vm623_vm2, %v927_v51  ;;  %v1595_v54 = vpop.eup %1594 }
 0x21a   : > { %1444 = vmatmul.mubr.msk.f32.gmra.mrb[18].mxu0 %vm623_vm2, %v928_v52  ;;  %v930_v58 = vmul.f32 %v1595_v54, %v1854_v9 }
 0x21c   : > { %v1597_v53 = vpop.eup %1596 }
 0x21d   : > { %v929_v56 = vmul.f32 %v1597_v53, %v1858_v13  ;;  %v1599_v59 = vpop.eup %1598 }
 0x21e   : > { %v932_v63 = vmul.f32 %v1599_v59, %v818_v21 }
 0x21f   : > { %1446 = vmatprep.mubr.msk.f32.mxu0 %vm623_vm2, %v929_v56 }
 0x220   : > { %v1601_v60 = vpop.eup %1600  ;;  %1447 = vmatmul.mubr.msk.f32.gmra.mrb[20].mxu0 %vm623_vm2, %v930_v58 }
 0x221   : > { %v931_v61 = vmul.f32 %v1601_v60, %v813_v24 }
 0x223   : > { %1449 = vmatprep.mubr.msk.f32.mxu0 %vm623_vm2, %v931_v61 }
 0x224   : > { %1450 = vmatmul.mubr.msk.f32.gmra.mrb[22].mxu0 %vm623_vm2, %v932_v63 }
 0x2cd   : > { %v1430_v1 = vpop.f32.mrb[8].mxu0 }
 0x2ce   : > { %v1066_v3 = vadd.f32 %v1430_v1, %v1288_v0  ;;  %v1060_v55 = vpop.f32.mrb[9].mxu0 }
 0x2cf   : > { %v1061_v57 = vadd.f32 %v1288_v0, %v1060_v55 }
 0x2d0   : > { %1141 = vst.msk [vmem:[%s1892_s12 + $0x8] sm:$0xff] %vm1139_vm3, %v1066_v3 }
 0x2d1   : > { %1140 = vst.msk [vmem:[%s1892_s12] sm:$0xff] %vm1139_vm3, %v1061_v57  ;;  %v1433_v4 = vpop.f32.mrb[10].mxu0 }
 0x2d2   : > { %v1076_v5 = vadd.f32 %v1433_v4, %v1288_v0  ;;  %v1070_v62 = vpop.f32.mrb[11].mxu0 }
 0x2d3   : > { %v1071_v6 = vadd.f32 %v1288_v0, %v1070_v62 }
 0x2d4   : > { %1143 = vst.msk [vmem:[%s1892_s12 + $0x18] sm:$0xff] %vm1139_vm3, %v1076_v5 }
 0x2d5   : > { %1142 = vst.msk [vmem:[%s1892_s12 + $0x10] sm:$0xff] %vm1139_vm3, %v1071_v6  ;;  %v1436_v2 = vpop.f32.mrb[12].mxu0 }
 0x2d6   : > { %v1086_v7 = vadd.f32 %v1436_v2, %v1288_v0  ;;  %v1080_v8 = vpop.f32.mrb[13].mxu0 }
 0x2d7   : > { %v1081_v9 = vadd.f32 %v1288_v0, %v1080_v8 }
 0x2d8   : > { %1145 = vst.msk [vmem:[%s1892_s12 + $0x28] sm:$0xff] %vm1139_vm3, %v1086_v7 }
 0x2d9   : > { %1144 = vst.msk [vmem:[%s1892_s12 + $0x20] sm:$0xff] %vm1139_vm3, %v1081_v9 }
 0x2e5   : > { %v1439_v10 = vpop.f32.mrb[14].mxu0 }
 0x2e6   : > { %v1096_v11 = vadd.f32 %v1439_v10, %v1288_v0  ;;  %v1090_v13 = vpop.f32.mrb[15].mxu0 }
 0x2e7   : > { %v1091_v14 = vadd.f32 %v1288_v0, %v1090_v13 }
 0x2e8   : > { %1147 = vst.msk [vmem:[%s1892_s12 + $0x38] sm:$0xff] %vm1139_vm3, %v1096_v11 }
 0x2e9   : > { %1146 = vst.msk [vmem:[%s1892_s12 + $0x30] sm:$0xff] %vm1139_vm3, %v1091_v14  ;;  %v1442_v15 = vpop.f32.mrb[16].mxu0 }
 0x2ea   : > { %v1106_v16 = vadd.f32 %v1442_v15, %v1288_v0  ;;  %v1100_v17 = vpop.f32.mrb[17].mxu0 }
 0x2eb   : > { %v1101_v18 = vadd.f32 %v1288_v0, %v1100_v17 }
 0x2ec   : > { %1149 = vst.msk [vmem:[%s1892_s12 + $0x48] sm:$0xff] %vm1139_vm3, %v1106_v16 }
 0x2ed   : > { %1148 = vst.msk [vmem:[%s1892_s12 + $0x40] sm:$0xff] %vm1139_vm3, %v1101_v18  ;;  %v1445_v19 = vpop.f32.mrb[18].mxu0 }
 0x2ee   : > { %v1116_v20 = vadd.f32 %v1445_v19, %v1288_v0  ;;  %v1110_v21 = vpop.f32.mrb[19].mxu0 }
 0x2ef   : > { %v1111_v22 = vadd.f32 %v1288_v0, %v1110_v21 }
 0x2f0   : > { %1151 = vst.msk [vmem:[%s1892_s12 + $0x58] sm:$0xff] %vm1139_vm3, %v1116_v20 }
 0x2f1   : > { %1150 = vst.msk [vmem:[%s1892_s12 + $0x50] sm:$0xff] %vm1139_vm3, %v1111_v22 }
 0x2f3   : > { %v1448_v24 = vpop.f32.mrb[20].mxu0 }
 0x2f4   : > { %v1126_v25 = vadd.f32 %v1448_v24, %v1288_v0  ;;  %v1120_v26 = vpop.f32.mrb[21].mxu0 }
 0x2f5   : > { %v1121_v27 = vadd.f32 %v1288_v0, %v1120_v26 }
 0x2f6   : > { %1153 = vst.msk [vmem:[%s1892_s12 + $0x68] sm:$0xff] %vm1139_vm3, %v1126_v25 }
 0x2f7   : > { %1152 = vst.msk [vmem:[%s1892_s12 + $0x60] sm:$0xff] %vm1139_vm3, %v1121_v27  ;;  %v1451_v28 = vpop.f32.mrb[22].mxu0 }
 0x2f8   : > { %v1136_v29 = vadd.f32 %v1451_v28, %v1288_v0  ;;  %v1130_v30 = vpop.f32.mrb[23].mxu0 }
 0x2f9   : > { %v1131_v31 = vadd.f32 %v1288_v0, %v1130_v30 }
 0x2fa   : > { %1155 = vst.msk [vmem:[%s1892_s12 + $0x78] sm:$0xff] %vm1139_vm3, %v1136_v29 }
 0x2fb   : > { %1154 = vst.msk [vmem:[%s1892_s12 + $0x70] sm:$0xff] %vm1139_vm3, %v1131_v31 }
 0x2fc PF: > { %s17_s24 = sadd.s32 1, %s1608_s24  }
 0x2fd   : > { %p14_p4 = scmp.ge.s32.totalorder %s17_s24, 4  }
 0x2ff   :  { %16 = sbr.rel (!%p14_p4) target bundleno = 1 (0x1), region = 78 }

</bundles_post_ra>
